<compile_context>
chip_gen: v6e
topology: v6e:2x2x1
jax: 0.10.0
libtpu: 0.0.40
codegen_flags: <defaults>
</compile_context>

<pallas_src>
import functools

import jax
import jax.numpy as jnp
from jax.experimental import pallas as pl
from jax.experimental.pallas import tpu as pltpu


def _round_up(x, m):
    return (x + m - 1) // m * m


def _vmem_capacity_bytes():
    """Physical VMEM of the attached chip (generation-aware), safe fallback."""
    try:
        return int(pltpu.get_tpu_info().vmem_capacity_bytes)
    except Exception:
        return 64 << 20          # conservative (v7x-sized) fallback


def _mosaic_params(dimension_semantics, vmem_bytes_estimate):
    # Generation-aware scoped-VMEM clamp (perf review): chip capacity minus
    # headroom for Mosaic-internal scratch, instead of a hard 64 MiB cap
    # (v5e/v6e: 128 MiB physical, v7x: 64 MiB).
    usable = max(_vmem_capacity_bytes() - (16 << 20), 4 << 20)
    vmem = int(min(max(2 * vmem_bytes_estimate, 4 << 20), usable))
    return pltpu.CompilerParams(dimension_semantics=dimension_semantics,
                                vmem_limit_bytes=vmem)


def _pick_tile_e(num_nodes, num_edges):
    """Edge-tile width: as wide as the (N, TE) one-hot temporaries allow
    (perf review: 512-1024 instead of 128), multiple of 128, capped by E."""
    budget = max(_vmem_capacity_bytes() // 4, 2 << 20)   # temporaries get ~1/4
    t = budget // max(1, 10 * num_nodes * 4)             # ~10 live (N,TE) f32 temps
    t = max(128, min(1024, (t // 128) * 128))
    return min(t, _round_up(max(num_edges, 1), 128))


# --------------------------------------------------------------------------
# Kernel 1a: per-edge raw scores + online per-dst-node softmax statistics
#            grid = (num_edge_tiles,)  -- "arbitrary" (m/l are accumulators)
# --------------------------------------------------------------------------
def _edge_raw_kernel(ssrc_ref, sdst_ref, wedge_ref, eft_ref, src_ref, dst_ref,
                     eraw_ref, m_ref, l_ref):
    k = pl.program_id(0)
    N = m_ref.shape[0]
    TE = src_ref.shape[1]
    neg_inf = jnp.float32(-jnp.inf)

    @pl.when(k == 0)
    def _():
        m_ref[...] = jnp.full_like(m_ref, neg_inf)
        l_ref[...] = jnp.zeros_like(l_ref)

    # Per-edge projection of this tile's edge features: (1,De)@(De,TE) on MXU.
    p_e = jnp.dot(wedge_ref[...], eft_ref[...],
                  preferred_element_type=jnp.float32)                      # (1, TE)

    # One-hot masks: nodes on sublanes, edges on lanes.
    node_iota = jax.lax.broadcasted_iota(jnp.int32, (N, TE), 0)
    src_oh = node_iota == src_ref[...]                                     # (N, TE)
    dst_oh = node_iota == dst_ref[...]                                     # (N, TE)

    # Gather node scores to edges on the (otherwise idle) MXU: (1,N)@(N,TE).
    g_src = jnp.dot(ssrc_ref[...], src_oh.astype(jnp.float32),
                    preferred_element_type=jnp.float32)                    # (1, TE)
    g_dst = jnp.dot(sdst_ref[...], dst_oh.astype(jnp.float32),
                    preferred_element_type=jnp.float32)                    # (1, TE)

    e_raw = g_src + g_dst + p_e                                            # (1, TE)
    eraw_ref[...] = e_raw

    # Online (rescaled) segment-softmax statistics keyed by dst node.
    m_old = m_ref[...]
    m_tile = jnp.max(jnp.where(dst_oh, e_raw, neg_inf), axis=1, keepdims=True)
    m_new = jnp.maximum(m_old, m_tile)                                     # (N, 1)

    # Gather m_new back to edges.  Kept as a where-select (NOT a dot) so the
    # -inf rows of never-touched nodes cannot poison the result.
    m_e = jnp.sum(jnp.where(dst_oh, m_new, 0.0), axis=0, keepdims=True)    # (1, TE)
    exp_e = jnp.exp(e_raw - m_e)                                           # TE exps
    l_tile = jnp.sum(jnp.where(dst_oh, exp_e, 0.0), axis=1, keepdims=True) # (N, 1)

    # NOTE: m_old - m_new is NaN for never-touched nodes (-inf - -inf); the
    # where discards it before the exp.  Keep the select — do not turn it into
    # arithmetic masking.
    scale = jnp.exp(jnp.where(m_old == neg_inf, neg_inf, m_old - m_new))   # (N, 1)
    l_ref[...] = scale * l_ref[...] + l_tile
    m_ref[...] = m_new


# --------------------------------------------------------------------------
# Kernel 1b: normalize each edge tile with the fused per-dst-node lse
#            grid = (num_edge_tiles,)  -- "parallel" (independent tiles)
# --------------------------------------------------------------------------
def _edge_norm_kernel(eraw_ref, dst_ref, lse_ref, out_ref, *,
                      add_to_edge_score):
    N = lse_ref.shape[1]
    TE = dst_ref.shape[1]
    node_iota = jax.lax.broadcasted_iota(jnp.int32, (N, TE), 0)
    dst_oh = (node_iota == dst_ref[...]).astype(jnp.float32)               # (N, TE)
    # Single gather (MXU): lse is sanitized to be finite for every node.
    lse_e = jnp.dot(lse_ref[...], dst_oh, preferred_element_type=jnp.float32)
    out_ref[...] = (jnp.exp(eraw_ref[...] - lse_e)
                    + jnp.float32(add_to_edge_score))


def edge_scores(node_feat, edge_feat, src, dst, w_src, w_dst, w_edge,
                add_to_edge_score=0.5, tile_e=None):
    """edge_softmax(linear_src(x)[src] + linear_dst(x)[dst] + linear_edge(ef))
    + add_to_edge_score.  Weights use the torch nn.Linear layout (1, in)."""
    N, D = node_feat.shape
    E, De = edge_feat.shape

    if tile_e is None:
        tile_e = _pick_tile_e(N, E)
    E_pad = _round_up(max(E, tile_e), tile_e)
    nt = E_pad // tile_e

    x = node_feat.astype(jnp.float32)
    # Node projections precomputed outside the edge kernels (perf review):
    # frees the resident (N, D) block + its double buffer from pass-1 VMEM.
    # Elementwise mul+sum (not a wrapper matmul) so host-side matmul precision
    # cannot perturb the comparison with the reference.
    w_src_r = w_src.reshape(1, D).astype(jnp.float32)
    w_dst_r = w_dst.reshape(1, D).astype(jnp.float32)
    ssrc_row = jnp.sum(x * w_src_r, axis=1).reshape(1, N)     # lane layout (1, N)
    sdst_row = jnp.sum(x * w_dst_r, axis=1).reshape(1, N)
    w_edge_row = w_edge.reshape(1, De).astype(jnp.float32)

    # Layout plumbing (wrapper-side): edges on the lane axis everywhere.
    eft = jnp.zeros((De, E_pad), jnp.float32).at[:, :E].set(
        edge_feat.astype(jnp.float32).T)
    pad_idx = jnp.int32(N)  # out-of-range sentinel -> all-false one-hot columns
    src_row = jnp.full((1, E_pad), pad_idx, jnp.int32).at[0, :E].set(
        src.astype(jnp.int32))
    dst_row = jnp.full((1, E_pad), pad_idx, jnp.int32).at[0, :E].set(
        dst.astype(jnp.int32))

    pass1_bytes = (2 * (De + 4) * tile_e * 4       # double-buffered tile blocks
                   + (4 * N + 2 * De) * 4          # resident rows + m/l
                   + 10 * N * tile_e * 4)          # one-hot / select temporaries
    cost1 = pl.CostEstimate(
        flops=nt * (2 * De * tile_e + 4 * N * tile_e + 10 * N * tile_e),
        transcendentals=nt * (tile_e + 2 * N),
        bytes_accessed=(De * E_pad + 4 * E_pad + 6 * N + De) * 4)

    e_raw, m, l = pl.pallas_call(
        _edge_raw_kernel,
        out_shape=(jax.ShapeDtypeStruct((1, E_pad), jnp.float32),
                   jax.ShapeDtypeStruct((N, 1), jnp.float32),
                   jax.ShapeDtypeStruct((N, 1), jnp.float32)),
        grid=(nt,),
        in_specs=[
            pl.BlockSpec((1, N), lambda k: (0, 0)),        # ssrc (resident row)
            pl.BlockSpec((1, N), lambda k: (0, 0)),        # sdst (resident row)
            pl.BlockSpec((1, De), lambda k: (0, 0)),       # w_edge
            pl.BlockSpec((De, tile_e), lambda k: (0, k)),  # edge_feat^T tile
            pl.BlockSpec((1, tile_e), lambda k: (0, k)),   # src ids tile
            pl.BlockSpec((1, tile_e), lambda k: (0, k)),   # dst ids tile
        ],
        out_specs=(
            pl.BlockSpec((1, tile_e), lambda k: (0, k)),   # e_raw tile
            pl.BlockSpec((N, 1), lambda k: (0, 0)),        # per-node max (acc)
            pl.BlockSpec((N, 1), lambda k: (0, 0)),        # per-node denom (acc)
        ),
        compiler_params=_mosaic_params(("arbitrary",), pass1_bytes),
        cost_estimate=cost1,
    )(ssrc_row, sdst_row, w_edge_row, eft, src_row, dst_row)
    # TODO(synk): on v7x, split pass 1 over a leading size-2 "parallel" axis
    # with per-core (m, l) partials merged here (max / rescaled-sum) so both
    # TensorCores are used; single-core chips would see no benefit.

    # Fused per-node log-sum-exp (perf review): one gather in pass 2 instead of
    # two, and no reciprocal.  Untouched nodes (l == 0) get a finite dummy 0 so
    # the MXU gather in pass 2 cannot be poisoned by -inf * 0.
    lse = jnp.where(l > 0.0, m + jnp.log(l), 0.0).reshape(1, N)

    pass2_bytes = (2 * 4 * tile_e * 4 + N * 4 + 4 * N * tile_e * 4)
    cost2 = pl.CostEstimate(
        flops=nt * 4 * N * tile_e,
        transcendentals=E_pad,
        bytes_accessed=(3 * E_pad + N) * 4)
    kern2 = functools.partial(_edge_norm_kernel,
                              add_to_edge_score=float(add_to_edge_score))
    e = pl.pallas_call(
        kern2,
        out_shape=jax.ShapeDtypeStruct((1, E_pad), jnp.float32),
        grid=(nt,),
        in_specs=[
            pl.BlockSpec((1, tile_e), lambda k: (0, k)),   # e_raw tile
            pl.BlockSpec((1, tile_e), lambda k: (0, k)),   # dst ids tile
            pl.BlockSpec((1, N), lambda k: (0, 0)),        # lse (resident row)
        ],
        out_specs=pl.BlockSpec((1, tile_e), lambda k: (0, k)),
        compiler_params=_mosaic_params(("parallel",), pass2_bytes),
        cost_estimate=cost2,
    )(e_raw, dst_row, lse)
    return e[0, :E]


# --------------------------------------------------------------------------
# Kernel 2: pool() — scatter_add of node features into clusters
#           (node_aggr == 'sum', pool_with_cluster_score=False)
#           grid = (core_shards, node_tiles) -- ("parallel", "arbitrary")
# --------------------------------------------------------------------------
def _pool_kernel(x_ref, cl_ref, out_ref):
    @pl.when(pl.program_id(1) == 0)
    def _():
        out_ref[...] = jnp.zeros_like(out_ref)

    C = out_ref.shape[0]
    TN = cl_ref.shape[1]
    # 0/1 scatter matrix (clusters on sublanes, node tile on lanes), matched to
    # the x dtype: exact in bf16, full-rate MXU; accumulation stays f32.
    oh = (jax.lax.broadcasted_iota(jnp.int32, (C, TN), 0) == cl_ref[...]
          ).astype(x_ref.dtype)
    out_ref[...] += jnp.dot(oh, x_ref[...], preferred_element_type=jnp.float32)


def pool(x, cluster, num_clusters, tile_n=256, num_core_shards=2,
         use_bf16=False):
    """Scatter-sum of node features by cluster id.  Each core-shard produces a
    partial (C, D) sum (uses both TensorCores on v7x); partials are added in
    the wrapper."""
    N, D = x.shape
    tile_n = max(8, min(tile_n, _round_up(N, 8)))
    chunk = tile_n * num_core_shards
    N_pad = _round_up(max(N, chunk), chunk)
    npt = N_pad // chunk                       # node tiles per core shard

    dtype = jnp.bfloat16 if use_bf16 else jnp.float32
    x_p = jnp.zeros((N_pad, D), dtype).at[:N].set(x.astype(dtype))
    cl = jnp.full((1, N_pad), jnp.int32(num_clusters), jnp.int32).at[0, :N].set(
        cluster.astype(jnp.int32))

    itemsize = 2 if use_bf16 else 4
    pool_bytes = (2 * tile_n * D * itemsize + 2 * tile_n * 4
                  + num_clusters * D * 4 + num_clusters * tile_n * itemsize)
    cost = pl.CostEstimate(
        flops=2 * N_pad * num_clusters * D,
        transcendentals=0,
        bytes_accessed=(N_pad * D * itemsize + N_pad * 4
                        + num_core_shards * num_clusters * D * 4))

    parts = pl.pallas_call(
        _pool_kernel,
        out_shape=jax.ShapeDtypeStruct((num_core_shards, num_clusters, D),
                                       jnp.float32),
        grid=(num_core_shards, npt),
        in_specs=[
            pl.BlockSpec((tile_n, D), lambda s, k: (s * npt + k, 0)),
            pl.BlockSpec((1, tile_n), lambda s, k: (0, s * npt + k)),
        ],
        out_specs=pl.BlockSpec((None, num_clusters, D),
                               lambda s, k: (s, 0, 0)),      # per-shard resident acc
        compiler_params=_mosaic_params(("parallel", "arbitrary"), pool_bytes),
        cost_estimate=cost,
    )(x_p, cl)
    # TODO(synk): for very large C*D, additionally tile the D axis as another
    # "parallel" grid dimension so only a (C, tile_d) accumulator is resident.
    return parts.sum(axis=0)


# --------------------------------------------------------------------------
# Pure-JAX references
# --------------------------------------------------------------------------
def ref_edge_scores(node_feat, edge_feat, src, dst, w_src, w_dst, w_edge,
                    add_to_edge_score=0.5):
    N = node_feat.shape[0]
    s_src = jnp.sum(node_feat * w_src, axis=1)        # w_src: (1, D)
    s_dst = jnp.sum(node_feat * w_dst, axis=1)
    p_e = jnp.sum(edge_feat * w_edge, axis=1)          # w_edge: (1, De)
    e = s_src[src] + s_dst[dst] + p_e
    m = jax.ops.segment_max(e, dst, num_segments=N)
    exp_e = jnp.exp(e - m[dst])
    denom = jax.ops.segment_sum(exp_e, dst, num_segments=N)
    return exp_e / denom[dst] + add_to_edge_score


def ref_pool(x, cluster, num_clusters):
    return jax.ops.segment_sum(x, cluster, num_segments=num_clusters)


# --------------------------------------------------------------------------
if __name__ == "__main__":
    key = jax.random.PRNGKey(0)
    k1, k2, k3, k4, k5, k6, k7, k8 = jax.random.split(key, 8)

    # Small graph consistent with the module: N nodes (D_n feats), E edges (D_e feats)
    N, D, E, De, C = 64, 128, 200, 16, 16

    node_feat = jax.random.normal(k1, (N, D), dtype=jnp.float32)
    edge_feat = jax.random.normal(k2, (E, De), dtype=jnp.float32)
    src = jax.random.randint(k3, (E,), 0, N, dtype=jnp.int32)
    dst = jax.random.randint(k4, (E,), 0, N, dtype=jnp.int32)
    cluster = jax.random.randint(k5, (N,), 0, C, dtype=jnp.int32)

    # nn.Linear(D, 1, bias=False) weights in torch layout (out=1, in=D)
    w_src = jax.random.normal(k6, (1, D), dtype=jnp.float32) * 0.1
    w_dst = jax.random.normal(k7, (1, D), dtype=jnp.float32) * 0.1
    w_edge = jax.random.normal(k8, (1, De), dtype=jnp.float32) * 0.1

    # forward edge-score path (edge_score_method='softmax', add_to_edge_score=0.5)
    e = edge_scores(node_feat, edge_feat, src, dst, w_src, w_dst, w_edge, 0.5)
    jax.block_until_ready(e)
    e_ref = ref_edge_scores(node_feat, edge_feat, src, dst,
                            w_src, w_dst, w_edge, 0.5)
    # MXU f32 gathers in the loop -> compare at 1e-4 (was pure-VPU before).
    assert jnp.allclose(e, e_ref, atol=1e-4, rtol=1e-4), (e, e_ref)

    # pool() path (scatter_add by cluster), exact f32 variant
    px = pool(node_feat, cluster, C)
    jax.block_until_ready(px)
    px_ref = ref_pool(node_feat, cluster, C)
    assert jnp.allclose(px, px_ref, atol=1e-4, rtol=1e-4), (px, px_ref)

    # pool() bf16 fast path: exact vs. a bf16-quantized reference (the 0/1
    # one-hot is exact in bf16; only x is quantized).
    px_bf16 = pool(node_feat, cluster, C, use_bf16=True)
    jax.block_until_ready(px_bf16)
    px_ref_bf16 = ref_pool(node_feat.astype(jnp.bfloat16).astype(jnp.float32),
                           cluster, C)
    assert jnp.allclose(px_bf16, px_ref_bf16, atol=1e-4, rtol=1e-4), (
        px_bf16, px_ref_bf16)

    # TODO(synk): __merge_edges__ (compute_cluster_with_graph greedy edge
    # contraction, coalesce, dgl.graph construction) is sequential,
    # data-dependent host-side graph bookkeeping with no Pallas equivalent.
    # TODO(synk): 'sigmoid'/'tanh' edge_score_method variants and training-time
    # dropout of edge scores are trivial elementwise additions if needed.
    # TODO(synk): for very large graphs, switch the one-hot (N, TE) scheme to
    # dst-sorted edges + PrefetchScalarGridSpec scalar prefetch so each edge
    # tile only touches a bounded node window (O(E*TN) instead of O(E*N)).

    print("KERNEL_OK")
</pallas_src>

<mosaic_0001>
module attributes {stable_mosaic.version = 11 : i64} {
  func.func @_edge_raw_kernel(%arg0: i32, %arg1: memref<1x64xf32, #tpu.memory_space<vmem>>, %arg2: memref<1x64xf32, #tpu.memory_space<vmem>>, %arg3: memref<1x16xf32, #tpu.memory_space<vmem>>, %arg4: memref<16x256xf32, #tpu.memory_space<vmem>>, %arg5: memref<1x256xi32, #tpu.memory_space<vmem>>, %arg6: memref<1x256xi32, #tpu.memory_space<vmem>>, %arg7: memref<1x256xf32, #tpu.memory_space<vmem>>, %arg8: memref<64x1xf32, #tpu.memory_space<vmem>>, %arg9: memref<64x1xf32, #tpu.memory_space<vmem>>) attributes {dimension_semantics = [#tpu.dimension_semantics<arbitrary>], iteration_bounds = array<i64: 1>, scalar_prefetch = 0 : i64, scratch_operands = 0 : i64, tpu.core_type = #tpu.core_type<tc>, window_params = [{pipeline_mode = #tpu.pipeline_mode<synchronous>, transform_indices = @transform_0, window_bounds = array<i64: 1, 64>}, {pipeline_mode = #tpu.pipeline_mode<synchronous>, transform_indices = @transform_1, window_bounds = array<i64: 1, 64>}, {pipeline_mode = #tpu.pipeline_mode<synchronous>, transform_indices = @transform_2, window_bounds = array<i64: 1, 16>}, {transform_indices = @transform_3, window_bounds = array<i64: 16, 256>}, {transform_indices = @transform_4, window_bounds = array<i64: 1, 256>}, {transform_indices = @transform_5, window_bounds = array<i64: 1, 256>}, {transform_indices = @transform_6, window_bounds = array<i64: 1, 256>}, {pipeline_mode = #tpu.pipeline_mode<synchronous>, transform_indices = @transform_7, window_bounds = array<i64: 64, 1>}, {pipeline_mode = #tpu.pipeline_mode<synchronous>, transform_indices = @transform_8, window_bounds = array<i64: 64, 1>}]} {
    %c0_i32 = arith.constant 0 : i32
    %0 = arith.cmpi eq, %arg0, %c0_i32 : i32
    %1 = arith.extui %0 : i1 to i32
    %cst = arith.constant 0xFF800000 : f32
    %c0_i32_0 = arith.constant 0 : i32
    %2 = arith.cmpi ne, %1, %c0_i32_0 : i32
    scf.if %2 {
      %57 = vector.broadcast %cst : f32 to vector<64x1xf32>
      %c0_33 = arith.constant 0 : index
      %c0_34 = arith.constant 0 : index
      %58 = vector.load %arg8[%c0_33, %c0_34] : memref<64x1xf32, #tpu.memory_space<vmem>>, vector<64x1xf32>
      tpu.vector_store %arg8[%c0_33, %c0_34], %57 {strides = array<i32>} : memref<64x1xf32, #tpu.memory_space<vmem>>, vector<64x1xf32>,
      %cst_35 = arith.constant 0.000000e+00 : f32
      %59 = vector.broadcast %cst_35 : f32 to vector<64x1xf32>
      %c0_36 = arith.constant 0 : index
      %c0_37 = arith.constant 0 : index
      %60 = vector.load %arg9[%c0_36, %c0_37] : memref<64x1xf32, #tpu.memory_space<vmem>>, vector<64x1xf32>
      tpu.vector_store %arg9[%c0_36, %c0_37], %59 {strides = array<i32>} : memref<64x1xf32, #tpu.memory_space<vmem>>, vector<64x1xf32>,
    } else {
    }
    %c0 = arith.constant 0 : index
    %c0_1 = arith.constant 0 : index
    %3 = vector.load %arg3[%c0, %c0_1] : memref<1x16xf32, #tpu.memory_space<vmem>>, vector<1x16xf32>
    %c0_2 = arith.constant 0 : index
    %c0_3 = arith.constant 0 : index
    %4 = vector.load %arg4[%c0_2, %c0_3] : memref<16x256xf32, #tpu.memory_space<vmem>>, vector<16x256xf32>
    %cst_4 = arith.constant dense<0.000000e+00> : vector<1x256xf32>
    %5 = tpu.matmul %3, %4, %cst_4 {dimension_numbers = #tpu.dot_dimension_numbers<[1], [0], [0], [1], [0, 0, 1, 1], [], []>} : vector<1x16xf32>, vector<16x256xf32>, vector<1x256xf32> -> vector<1x256xf32>
    %6 = tpu.iota {dimensions = array<i32: 0>} : vector<64x256xi32>
    %c0_5 = arith.constant 0 : index
    %c0_6 = arith.constant 0 : index
    %7 = vector.load %arg5[%c0_5, %c0_6] : memref<1x256xi32, #tpu.memory_space<vmem>>, vector<1x256xi32>
    %8 = vector.broadcast %7 : vector<1x256xi32> to vector<64x256xi32>
    %9 = arith.cmpi eq, %6, %8 : vector<64x256xi32>
    %c0_7 = arith.constant 0 : index
    %c0_8 = arith.constant 0 : index
    %10 = vector.load %arg6[%c0_7, %c0_8] : memref<1x256xi32, #tpu.memory_space<vmem>>, vector<1x256xi32>
    %11 = vector.broadcast %10 : vector<1x256xi32> to vector<64x256xi32>
    %12 = arith.cmpi eq, %6, %11 : vector<64x256xi32>
    %c0_9 = arith.constant 0 : index
    %c0_10 = arith.constant 0 : index
    %13 = vector.load %arg1[%c0_9, %c0_10] : memref<1x64xf32, #tpu.memory_space<vmem>>, vector<1x64xf32>
    %14 = arith.extui %9 : vector<64x256xi1> to vector<64x256xi32>
    %15 = arith.sitofp %14 : vector<64x256xi32> to vector<64x256xf32>
    %cst_11 = arith.constant dense<0.000000e+00> : vector<1x256xf32>
    %16 = tpu.matmul %13, %15, %cst_11 {dimension_numbers = #tpu.dot_dimension_numbers<[1], [0], [0], [1], [0, 0, 1, 1], [], []>} : vector<1x64xf32>, vector<64x256xf32>, vector<1x256xf32> -> vector<1x256xf32>
    %c0_12 = arith.constant 0 : index
    %c0_13 = arith.constant 0 : index
    %17 = vector.load %arg2[%c0_12, %c0_13] : memref<1x64xf32, #tpu.memory_space<vmem>>, vector<1x64xf32>
    %18 = arith.extui %12 : vector<64x256xi1> to vector<64x256xi32>
    %19 = arith.sitofp %18 : vector<64x256xi32> to vector<64x256xf32>
    %cst_14 = arith.constant dense<0.000000e+00> : vector<1x256xf32>
    %20 = tpu.matmul %17, %19, %cst_14 {dimension_numbers = #tpu.dot_dimension_numbers<[1], [0], [0], [1], [0, 0, 1, 1], [], []>} : vector<1x64xf32>, vector<64x256xf32>, vector<1x256xf32> -> vector<1x256xf32>
    %21 = arith.addf %16, %20 : vector<1x256xf32>
    %22 = arith.addf %21, %5 : vector<1x256xf32>
    %c0_15 = arith.constant 0 : index
    %c0_16 = arith.constant 0 : index
    %23 = vector.load %arg7[%c0_15, %c0_16] : memref<1x256xf32, #tpu.memory_space<vmem>>, vector<1x256xf32>
    tpu.vector_store %arg7[%c0_15, %c0_16], %22 {strides = array<i32>} : memref<1x256xf32, #tpu.memory_space<vmem>>, vector<1x256xf32>,
    %c0_17 = arith.constant 0 : index
    %c0_18 = arith.constant 0 : index
    %24 = vector.load %arg8[%c0_17, %c0_18] : memref<64x1xf32, #tpu.memory_space<vmem>>, vector<64x1xf32>
    %cst_19 = arith.constant 0xFF800000 : f32
    %25 = vector.shape_cast %22 : vector<1x256xf32> to vector<1x256xf32>
    %26 = vector.broadcast %25 : vector<1x256xf32> to vector<64x256xf32>
    %27 = vector.broadcast %cst_19 : f32 to vector<64x256xf32>
    %28 = arith.select %12, %26, %27 : vector<64x256xi1>, vector<64x256xf32>
    %cst_20 = arith.constant dense<0xFF800000> : vector<64xf32>
    %29 = vector.multi_reduction <maximumf>, %28, %cst_20 [1] : vector<64x256xf32> to vector<64xf32>
    %30 = vector.shape_cast %29 : vector<64xf32> to vector<64x1xf32>
    %31 = arith.maximumf %24, %30 : vector<64x1xf32>
    %cst_21 = arith.constant 0.000000e+00 : f32
    %32 = vector.shape_cast %31 : vector<64x1xf32> to vector<64x1xf32>
    %33 = vector.broadcast %32 : vector<64x1xf32> to vector<64x256xf32>
    %34 = vector.broadcast %cst_21 : f32 to vector<64x256xf32>
    %35 = arith.select %12, %33, %34 : vector<64x256xi1>, vector<64x256xf32>
    %cst_22 = arith.constant dense<0.000000e+00> : vector<256xf32>
    %36 = vector.multi_reduction <add>, %35, %cst_22 [0] : vector<64x256xf32> to vector<256xf32>
    %37 = vector.shape_cast %36 : vector<256xf32> to vector<1x256xf32>
    %38 = arith.subf %22, %37 : vector<1x256xf32>
    %39 = math.exp %38 : vector<1x256xf32>
    %cst_23 = arith.constant 0.000000e+00 : f32
    %40 = vector.shape_cast %39 : vector<1x256xf32> to vector<1x256xf32>
    %41 = vector.broadcast %40 : vector<1x256xf32> to vector<64x256xf32>
    %42 = vector.broadcast %cst_23 : f32 to vector<64x256xf32>
    %43 = arith.select %12, %41, %42 : vector<64x256xi1>, vector<64x256xf32>
    %cst_24 = arith.constant dense<0.000000e+00> : vector<64xf32>
    %44 = vector.multi_reduction <add>, %43, %cst_24 [1] : vector<64x256xf32> to vector<64xf32>
    %45 = vector.shape_cast %44 : vector<64xf32> to vector<64x1xf32>
    %cst_25 = arith.constant 0xFF800000 : f32
    %46 = vector.broadcast %cst_25 : f32 to vector<64x1xf32>
    %47 = arith.cmpf oeq, %24, %46 : vector<64x1xf32>
    %48 = arith.subf %24, %31 : vector<64x1xf32>
    %cst_26 = arith.constant 0xFF800000 : f32
    %49 = vector.broadcast %cst_26 : f32 to vector<64x1xf32>
    %50 = arith.select %47, %49, %48 : vector<64x1xi1>, vector<64x1xf32>
    %51 = math.exp %50 : vector<64x1xf32>
    %c0_27 = arith.constant 0 : index
    %c0_28 = arith.constant 0 : index
    %52 = vector.load %arg9[%c0_27, %c0_28] : memref<64x1xf32, #tpu.memory_space<vmem>>, vector<64x1xf32>
    %53 = arith.mulf %51, %52 : vector<64x1xf32>
    %54 = arith.addf %53, %45 : vector<64x1xf32>
    %c0_29 = arith.constant 0 : index
    %c0_30 = arith.constant 0 : index
    %55 = vector.load %arg9[%c0_29, %c0_30] : memref<64x1xf32, #tpu.memory_space<vmem>>, vector<64x1xf32>
    tpu.vector_store %arg9[%c0_29, %c0_30], %54 {strides = array<i32>} : memref<64x1xf32, #tpu.memory_space<vmem>>, vector<64x1xf32>,
    %c0_31 = arith.constant 0 : index
    %c0_32 = arith.constant 0 : index
    %56 = vector.load %arg8[%c0_31, %c0_32] : memref<64x1xf32, #tpu.memory_space<vmem>>, vector<64x1xf32>
    tpu.vector_store %arg8[%c0_31, %c0_32], %31 {strides = array<i32>} : memref<64x1xf32, #tpu.memory_space<vmem>>, vector<64x1xf32>,
    return
  }
  func.func @transform_0(%arg0: i32) -> (i32, i32) {
    %c0_i32 = arith.constant 0 : i32
    %c0_i32_0 = arith.constant 0 : i32
    %c0_i32_1 = arith.constant 0 : i32
    return %c0_i32, %c0_i32_0 : i32, i32
  }
  func.func @transform_1(%arg0: i32) -> (i32, i32) {
    %c0_i32 = arith.constant 0 : i32
    %c0_i32_0 = arith.constant 0 : i32
    %c0_i32_1 = arith.constant 0 : i32
    return %c0_i32, %c0_i32_0 : i32, i32
  }
  func.func @transform_2(%arg0: i32) -> (i32, i32) {
    %c0_i32 = arith.constant 0 : i32
    %c0_i32_0 = arith.constant 0 : i32
    %c0_i32_1 = arith.constant 0 : i32
    return %c0_i32, %c0_i32_0 : i32, i32
  }
  func.func @transform_3(%arg0: i32) -> (i32, i32) {
    %c0_i32 = arith.constant 0 : i32
    %c0_i32_0 = arith.constant 0 : i32
    return %c0_i32, %arg0 : i32, i32
  }
  func.func @transform_4(%arg0: i32) -> (i32, i32) {
    %c0_i32 = arith.constant 0 : i32
    %c0_i32_0 = arith.constant 0 : i32
    return %c0_i32, %arg0 : i32, i32
  }
  func.func @transform_5(%arg0: i32) -> (i32, i32) {
    %c0_i32 = arith.constant 0 : i32
    %c0_i32_0 = arith.constant 0 : i32
    return %c0_i32, %arg0 : i32, i32
  }
  func.func @transform_6(%arg0: i32) -> (i32, i32) {
    %c0_i32 = arith.constant 0 : i32
    %c0_i32_0 = arith.constant 0 : i32
    return %c0_i32, %arg0 : i32, i32
  }
  func.func @transform_7(%arg0: i32) -> (i32, i32) {
    %c0_i32 = arith.constant 0 : i32
    %c0_i32_0 = arith.constant 0 : i32
    %c0_i32_1 = arith.constant 0 : i32
    return %c0_i32, %c0_i32_0 : i32, i32
  }
  func.func @transform_8(%arg0: i32) -> (i32, i32) {
    %c0_i32 = arith.constant 0 : i32
    %c0_i32_0 = arith.constant 0 : i32
    %c0_i32_1 = arith.constant 0 : i32
    return %c0_i32, %c0_i32_0 : i32, i32
  }
}

</mosaic_0001>

<bundles_post_ra>
// kernel: tpu_custom_call.1
= control target key start
LH: loop header
LB: loop body
LE: loop exit
PB: predicated region body
PF: predicated region fallthrough
CT: control target
= control target key end

     0   :  { %14 = vsyncpa [#allocation3], 0  ;;  %s1641_s0 = inlined_call_operand.hbm [shape: f32[1,64], index: 0, kind: input, shape index: {}]   ;;  %s1642_s1 = inlined_call_operand.vmem [shape: f32[1,64], index: 1, kind: input, shape index: {}]   ;;  %s1643_s2 = inlined_call_operand.hbm [shape: f32[1,16], index: 2, kind: input, shape index: {}]   ;;  %s1644_s3 = inlined_call_operand.hbm [shape: f32[16,256], index: 3, kind: input, shape index: {}]   ;;  %s1645_s4 = inlined_call_operand.vmem [shape: s32[1,256], index: 4, kind: input, shape index: {}]   ;;  %s1646_s5 = inlined_call_operand.vmem [shape: s32[1,256], index: 5, kind: input, shape index: {}]   ;;  %s1647_s6 = inlined_call_operand.hbm [shape: f32[1,256], index: 6, kind: output, shape index: {0}]   ;;  %s1648_s7 = inlined_call_operand.vmem [shape: f32[64,1], index: 7, kind: output, shape index: {1}]   ;;  %s1649_s8 = inlined_call_operand.vmem [shape: f32[64,1], index: 8, kind: output, shape index: {2}]  }
   0x1   :  { %15 = vsyncpa [#allocation6], 0 }
   0x2   :  { %16 = vsyncpa [#allocation4], 0  ;;  %s955_s27 = smov [#allocation5]   ;;  %s956_s29 = smov [#allocation2]  }
   0x3   :  { %s35_s28 = sshll.u32 %s955_s27, 4  ;;  %s23_s30 = sshll.u32 %s956_s29, 4  ;;  %s36_s28 = int_to_ptr.vmem [resolvable:$true] %s35_s28  ;;  %s24_s30 = int_to_ptr.vmem [resolvable:$true] %s23_s30 }
   0x4   :  { %s877_s9 = scalar_lea.vmem %s36_s28, 16  ;;  %s881_s10 = scalar_lea.vmem %s36_s28, 32 }
   0x5   :  { %p878_p0 = scmp.ne.s32.totalorder %s36_s28, %s877_s9  ;;  %p882_p1 = scmp.lt.s32.totalorder %s36_s28, %s36_s28 }
   0x6   :  { %p883_p2 = scmp.lt.s32.totalorder %s881_s10, %s877_s9 }
   0x8   :  { %p884_p3 = por %p883_p2, %p882_p1 }
   0xa   :  { %p885_p4 = pnand %p884_p3, %p878_p0 }
   0xc   :  { %888 = shalt.err (!%p885_p4)
}
   0xd   :  { %38 = dma.hbm_to_vmem [thread:$0]  %s1643_s2, 16, %s36_s28, [#allocation6]  }
   0xe   :  { %s897_s13 = scalar_lea.vmem %s24_s30, 16  ;;  %s901_s14 = scalar_lea.vmem %s24_s30, 32 }
   0xf   :  { %p898_p5 = scmp.ne.s32.totalorder %s24_s30, %s897_s13  ;;  %p902_p6 = scmp.lt.s32.totalorder %s24_s30, %s24_s30 }
  0x10   :  { %p903_p7 = scmp.lt.s32.totalorder %s901_s14, %s897_s13 }
  0x12   :  { %p904_p8 = por %p903_p7, %p902_p6 }
  0x14   :  { %p905_p9 = pnand %p904_p8, %p898_p5 }
  0x16   :  { %908 = shalt.err (!%p905_p9)
}
  0x17   :  { %26 = dma.hbm_to_vmem [thread:$0]  %s1641_s0, 16, %s24_s30, [#allocation3]  }
  0x18   :  { %s957_s17 = smov [#allocation7]  }
  0x19   :  { %s44_s18 = sshll.u32 %s957_s17, 4  ;;  %s45_s18 = int_to_ptr.vmem [resolvable:$true] %s44_s18 }
  0x1a   :  { %s917_s19 = scalar_lea.vmem %s45_s18, 512  ;;  %p922_p11 = scmp.lt.s32.totalorder %s45_s18, %s45_s18 }
  0x1b   :  { %p918_p10 = scmp.ne.s32.totalorder %s45_s18, %s917_s19  ;;  %p923_p12 = scmp.lt.s32.totalorder %s917_s19, %s917_s19 }
  0x1d   :  { %p924_p13 = por %p923_p12, %p922_p11 }
  0x1f   :  { %p925_p0 = pnand %p924_p13, %p918_p10 }
  0x21   :  { %928 = shalt.err (!%p925_p0)
}
  0x22   :  { %s958_s2 = smov 256   ;;  %s959_s20 = smov 16  }
  0x23   :  { %50 = dma.hbm_to_vmem [thread:$0]  %s1644_s3, 512, %s45_s18, [#allocation6], %s958_s2, %s958_s2, %s959_s20  }
  0x24   :  { %949 = dma.done.wait [#allocation3], 16  }
  0x25   :  { %950 = vsyncadd [#allocation3], 4294967280 }
  0x26   :  { %951 = dma.done.wait [#allocation6], 528  }
  0x27   :  { %952 = vsyncadd [#allocation6], 4294966768  ;;  %v165_v0 = vlaneseq  ;;  %v960_v1 = vmov 0.0   ;;  %v89_v5 = vld [vmem:[#allocation7 + $0x18] sm:$0xff]  ;;  %v88_v6 = vld [vmem:[#allocation7 + $0x10] sm:$0xff]  ;;  %vm90_vm0 = vcmask 130048  }
  0x28   :  { %158 = vmatprep.mubr.f32.mxu0 %v960_v1  ;;  %358 = vmatprep.mubr.f32.mxu1 %v960_v1  ;;  %v87_v7 = vld [vmem:[#allocation7 + $0x8] sm:$0xff]  ;;  %v86_v10 = vld [vmem:[#allocation7] sm:$0xff]  ;;  %v199_v11 = vld [vmem:[%s1646_s5] sm:$0x3]  ;;  %v961_v20 = vmov 1.0   ;;  %v962_v26 = vmov -inf  }
  0x29   :  { %v1023_v2 = vshrl.u32 %v165_v0, 7  ;;  %122 = vmatprep.subr.mxu0 %v89_v5  ;;  %v85_v13 = vld [vmem:[#allocation5] sm:$0x1]  ;;  %v174_v15 = vld [vmem:[%s1645_s4] sm:$0x3] }
  0x2a   :  { %123 = vmatpush1.msra.mxu0 %v88_v6  ;;  %v257_v24 = vld [vmem:[%s1642_s1] sm:$0x1]  ;;  %v963_v32 = vmov 1966171168  }
  0x2b   :  { %v181_v3 = vsub.s32 1, %v1023_v2  ;;  %v1027_v4 = vsub.s32 0, %v1023_v2  ;;  %v1030_v8 = vadd.s32 56, %v1023_v2  ;;  %v1033_v9 = vadd.s32 48, %v1023_v2  ;;  %124 = vmatprep.subr.mxu0 %v87_v7  ;;  %v224_v25 = vld [vmem:[#allocation2] sm:$0x1] }
  0x2c   :  { %v1047_v16 = vadd.s32 40, %v1023_v2  ;;  %v1055_v19 = vadd.s32 32, %v1023_v2  ;;  %125 = vmatpush1.msra.mxu0 %v86_v10  ;;  %v1085_v21 = vadd.s32 24, %v1023_v2  ;;  %v1106_v22 = vadd.s32 16, %v1023_v2 }
  0x2d   :  { %v1038_v12 = vrot.slane %v199_v11, %v181_v3  ;;  %v1041_v14 = vrot.slane %v199_v11, %v1027_v4  ;;  %v1050_v17 = vrot.slane %v174_v15, %v1027_v4  ;;  %v1052_v18 = vrot.slane %v174_v15, %v181_v3  ;;  %769 = vmatmul.mubr.msk.f32.vlgmr.msra.gmra.mxu0 %vm90_vm0, %v85_v13 }
  0x2e   :  { %v1127_v23 = vadd.s32 8, %v1023_v2  ;;  %432 = vmatprep.mubr.f32.mxu0 %v960_v1  ;;  %v445_v33 = vunpack.c.l.s4 %v963_v32  ;;  %v964_v10 = vmov 0  }
  0x2f   :  { %vm1653_vm1 = vcmp.eq.s32.totalorder %v1030_v8, %v1038_v12  ;;  %vm1651_vm2 = vcmp.eq.s32.totalorder %v1030_v8, %v1041_v14  ;;  %vm1652_vm3 = vcmp.eq.s32.totalorder %v1033_v9, %v1038_v12  ;;  %vm1650_vm4 = vcmp.eq.s32.totalorder %v1033_v9, %v1041_v14  ;;  %847 = vset.pattern.permute.xlu0 %v964_v10 }
  0x30   :  { %802 = vmatprep.subr.msk.mxu1 %vm1653_vm1, %v961_v20  ;;  %vm198_vm5 = vcmp.eq.s32.totalorder %v1030_v8, %v1052_v18  ;;  %vm197_vm6 = vcmp.eq.s32.totalorder %v1030_v8, %v1050_v17  ;;  %vm196_vm7 = vcmp.eq.s32.totalorder %v1033_v9, %v1052_v18  ;;  %vm1655_vm8 = vcmp.eq.s32.totalorder %v1047_v16, %v1038_v12 }
  0x31   :  { %803 = vmatpush1.msk.msra.mxu1 %vm1651_vm2, %v961_v20  ;;  %819 = vmatprep.subr.msk.mxu0 %vm198_vm5, %v961_v20  ;;  %vm195_vm9 = vcmp.eq.s32.totalorder %v1033_v9, %v1050_v17  ;;  %vm218_vm10 = vcmp.eq.s32.totalorder %v1047_v16, %v1041_v14  ;;  %vm194_vm11 = vcmp.eq.s32.totalorder %v1047_v16, %v1052_v18  ;;  %v446_v38 = vunpack.c.0.s8 %v445_v33 }
  0x32   :  { %804 = vmatprep.subr.msk.mxu1 %vm1652_vm3, %v961_v20  ;;  %820 = vmatpush1.msk.msra.mxu0 %vm197_vm6, %v961_v20  ;;  %vm217_vm12 = vcmp.eq.s32.totalorder %v1055_v19, %v1038_v12  ;;  %vm193_vm13 = vcmp.eq.s32.totalorder %v1047_v16, %v1050_v17  ;;  %vm1654_vm14 = vcmp.eq.s32.totalorder %v1055_v19, %v1041_v14 }
  0x33   :  { %805 = vmatpush1.msk.msra.mxu1 %vm1650_vm4, %v961_v20  ;;  %821 = vmatprep.subr.msk.mxu0 %vm196_vm7, %v961_v20  ;;  %vm192_vm15 = vcmp.eq.s32.totalorder %v1055_v19, %v1052_v18  ;;  %vm215_vm0 = vcmp.eq.s32.totalorder %v1085_v21, %v1038_v12  ;;  %vm191_vm5 = vcmp.eq.s32.totalorder %v1055_v19, %v1050_v17 }
  0x34   :  { %806 = vmatprep.subr.msk.mxu1 %vm1655_vm8, %v961_v20  ;;  %822 = vmatpush1.msk.msra.mxu0 %vm195_vm9, %v961_v20  ;;  %vm214_vm6 = vcmp.eq.s32.totalorder %v1085_v21, %v1041_v14  ;;  %vm190_vm7 = vcmp.eq.s32.totalorder %v1085_v21, %v1052_v18  ;;  %vm213_vm9 = vcmp.eq.s32.totalorder %v1106_v22, %v1038_v12 }
  0x35   :  { %807 = vmatpush1.msk.msra.mxu1 %vm218_vm10, %v961_v20  ;;  %823 = vmatprep.subr.msk.mxu0 %vm194_vm11, %v961_v20  ;;  %vm189_vm11 = vcmp.eq.s32.totalorder %v1085_v21, %v1050_v17  ;;  %vm188_vm4 = vcmp.eq.s32.totalorder %v1106_v22, %v1052_v18  ;;  %vm187_vm2 = vcmp.eq.s32.totalorder %v1106_v22, %v1050_v17 }
  0x36   :  { %808 = vmatprep.subr.msk.mxu1 %vm217_vm12, %v961_v20  ;;  %824 = vmatpush1.msk.msra.mxu0 %vm193_vm13, %v961_v20  ;;  %vm212_vm13 = vcmp.eq.s32.totalorder %v1106_v22, %v1041_v14  ;;  %vm186_vm3 = vcmp.eq.s32.totalorder %v1127_v23, %v1052_v18  ;;  %vm185_vm1 = vcmp.eq.s32.totalorder %v1127_v23, %v1050_v17 }
  0x37   :  { %809 = vmatpush1.msk.msra.mxu1 %vm1654_vm14, %v961_v20  ;;  %825 = vmatprep.subr.msk.mxu0 %vm192_vm15, %v961_v20  ;;  %vm211_vm15 = vcmp.eq.s32.totalorder %v1127_v23, %v1038_v12  ;;  %vm184_vm14 = vcmp.eq.s32.totalorder %v1023_v2, %v1052_v18  ;;  %v449_v43 = vsub.s32 %v446_v38, %v1023_v2 }
  0x38   :  { %810 = vmatprep.subr.msk.mxu1 %vm215_vm0, %v961_v20  ;;  %826 = vmatpush1.msk.msra.mxu0 %vm191_vm5, %v961_v20  ;;  %vm210_vm5 = vcmp.eq.s32.totalorder %v1127_v23, %v1041_v14 }
  0x39   :  { %811 = vmatpush1.msk.msra.mxu1 %vm214_vm6, %v961_v20  ;;  %827 = vmatprep.subr.msk.mxu0 %vm190_vm7, %v961_v20  ;;  %vm209_vm7 = vcmp.eq.s32.totalorder %v1023_v2, %v1038_v12 }
  0x3a   :  { %812 = vmatprep.subr.msk.mxu1 %vm213_vm9, %v961_v20  ;;  %828 = vmatpush1.msk.msra.mxu0 %vm189_vm11, %v961_v20  ;;  %vm208_vm11 = vcmp.eq.s32.totalorder %v1023_v2, %v1041_v14 }
  0x3b   :  { %813 = vmatpush1.msk.msra.mxu1 %vm212_vm13, %v961_v20  ;;  %829 = vmatprep.subr.msk.mxu0 %vm188_vm4, %v961_v20  ;;  %vm290_vm4 = vcmask 523264  }
  0x3c   :  { %814 = vmatprep.subr.msk.mxu1 %vm211_vm15, %v961_v20  ;;  %830 = vmatpush1.msk.msra.mxu0 %vm187_vm2, %v961_v20  ;;  %vm183_vm2 = vcmp.eq.s32.totalorder %v1023_v2, %v1050_v17 }
  0x3d   :  { %815 = vmatpush1.msk.msra.mxu1 %vm210_vm5, %v961_v20  ;;  %831 = vmatprep.subr.msk.mxu0 %vm186_vm3, %v961_v20  ;;  %vm68_vm3 = vcmask 7168  }
  0x3e   :  { %816 = vmatprep.subr.msk.mxu1 %vm209_vm7, %v961_v20  ;;  %832 = vmatpush1.msk.msra.mxu0 %vm185_vm1, %v961_v20  ;;  %71 = vst.msk [vmem:[%s1648_s7 + $0x10] sm:$0xff] %vm68_vm3, %v962_v26  ;;  %69 = vst.msk [vmem:[%s1648_s7] sm:$0xff] %vm68_vm3, %v962_v26  ;;  %vm461_vm1 = vcmp.lt.s32.totalorder %v165_v0, 256 }
  0x3f   :  { %817 = vmatpush1.msk.msra.mxu1 %vm208_vm11, %v961_v20  ;;  %833 = vmatprep.subr.msk.mxu0 %vm184_vm14, %v961_v20  ;;  %70 = vst.msk [vmem:[%s1648_s7 + $0x8] sm:$0xff] %vm68_vm3, %v962_v26  ;;  %72 = vst.msk [vmem:[%s1648_s7 + $0x18] sm:$0xff] %vm68_vm3, %v962_v26  ;;  %vm1656_vm14 = vcmp.eq.s32.totalorder %v1055_v19, %v1041_v14 }
  0x40   :  { %818 = vmatmul.mubr.msk.f32.vlgmr.msra.gmra.mxu1 %vm290_vm4, %v257_v24  ;;  %834 = vmatpush1.msk.msra.mxu0 %vm183_vm2, %v961_v20  ;;  %73 = vst.msk [vmem:[%s1648_s7 + $0x20] sm:$0xff] %vm68_vm3, %v962_v26  ;;  %74 = vst.msk [vmem:[%s1648_s7 + $0x28] sm:$0xff] %vm68_vm3, %v962_v26  ;;  %vm1658_vm2 = vcmp.eq.s32.totalorder %v1033_v9, %v1038_v12 }
  0x41   :  { %835 = vmatmul.mubr.msk.f32.vlgmr.msra.gmra.mxu0 %vm290_vm4, %v224_v25  ;;  %75 = vst.msk [vmem:[%s1648_s7 + $0x30] sm:$0xff] %vm68_vm3, %v962_v26  ;;  %76 = vst.msk [vmem:[%s1648_s7 + $0x38] sm:$0xff] %vm68_vm3, %v962_v26  ;;  %vm1657_vm4 = vcmp.eq.s32.totalorder %v1030_v8, %v1038_v12  ;;  %848 = vset.pattern.permute.xlu1 %v964_v10 }
  0x42   :  { %77 = vst.msk [vmem:[%s1649_s8] sm:$0xff] %vm68_vm3, %v960_v1  ;;  %78 = vst.msk [vmem:[%s1649_s8 + $0x8] sm:$0xff] %vm68_vm3, %v960_v1 }
  0x43   :  { %79 = vst.msk [vmem:[%s1649_s8 + $0x10] sm:$0xff] %vm68_vm3, %v960_v1  ;;  %80 = vst.msk [vmem:[%s1649_s8 + $0x18] sm:$0xff] %vm68_vm3, %v960_v1 }
  0x44   :  { %81 = vst.msk [vmem:[%s1649_s8 + $0x20] sm:$0xff] %vm68_vm3, %v960_v1  ;;  %82 = vst.msk [vmem:[%s1649_s8 + $0x28] sm:$0xff] %vm68_vm3, %v960_v1 }
  0x45   :  { %83 = vst.msk [vmem:[%s1649_s8 + $0x30] sm:$0xff] %vm68_vm3, %v960_v1  ;;  %84 = vst.msk [vmem:[%s1649_s8 + $0x38] sm:$0xff] %vm68_vm3, %v960_v1  ;;  %v1349_v11 = vld [vmem:[%s1648_s7 + $0x10] sm:$0xff]  ;;  %v1354_v13 = vld [vmem:[%s1648_s7] sm:$0xff] }
  0x46   :  { %v1365_v24 = vld [vmem:[%s1648_s7 + $0x18] sm:$0xff]  ;;  %v1370_v25 = vld [vmem:[%s1648_s7 + $0x8] sm:$0xff] }
  0x48   :  { %v1424_v38 = vld [vmem:[%s1648_s7 + $0x30] sm:$0xff] }
  0xed   :  { %v160_v27 = vpop.f32.mrf.mxu0 }
  0xef   :  { %v162_v28 = vpop.f32.mrf.mxu0 }
 0x100   :  { %v360_v29 = vpop.f32.mrf.mxu1 }
 0x101   :  { %v434_v30 = vpop.f32.mrf.mxu0 }
 0x102   :  { %v362_v31 = vpop.f32.mrf.mxu1  ;;  %v435_v34 = vadd.f32 %v434_v30, %v360_v29  ;;  %v1392_v30 = vld [vmem:[%s1648_s7 + $0x28] sm:$0xff] }
 0x103   :  { %v436_v35 = vpop.f32.mrf.mxu0 }
 0x104   :  { %v1286_v36 = vadd.f32 %v435_v34, %v160_v27  ;;  %v437_v37 = vadd.f32 %v436_v35, %v362_v31  ;;  %v1408_v31 = vld [vmem:[%s1648_s7 + $0x20] sm:$0xff] }
 0x106   :  { %v475_v39 = vrot.slane %v1286_v36, %v1027_v4  ;;  %v1290_v40 = vadd.f32 %v437_v37, %v162_v28  ;;  %v1419_v37 = vld [vmem:[%s1648_s7 + $0x38] sm:$0xff] }
 0x108   :  { %v479_v41 = vrot.slane %v1290_v40, %v1027_v4  ;;  %v443_v42 = vcombine.low %v1286_v36, %v1290_v40  ;;  %v484_v44 = vsel %vm212_vm13, %v475_v39, -inf  ;;  %v480_v46 = vsel %vm208_vm11, %v475_v39, -inf }
 0x109   :  { %v486_v52 = vsel %vm214_vm6, %v475_v39, -inf  ;;  %v482_v53 = vsel %vm210_vm5, %v475_v39, -inf  ;;  %v490_v60 = vsel %vm218_vm10, %v475_v39, -inf  ;;  %v488_v61 = vsel %vm1656_vm14, %v475_v39, -inf }
 0x10a   :  { %v485_v45 = vsel %vm213_vm9, %v479_v41, -inf  ;;  %v481_v47 = vsel %vm209_vm7, %v479_v41, -inf  ;;  %v487_v50 = vsel %vm215_vm0, %v479_v41, -inf  ;;  %v483_v51 = vsel %vm211_vm15, %v479_v41, -inf }
 0x10b   :  { %v502_v48 = vmax.f32 %v484_v44, %v485_v45  ;;  %v496_v49 = vmax.f32 %v480_v46, %v481_v47  ;;  %v450_v54 = vrot.slane %v443_v42, %v449_v43  ;;  %v505_v55 = vmax.f32 %v486_v52, %v487_v50 }
 0x10c   :  { %v499_v56 = vmax.f32 %v482_v53, %v483_v51  ;;  %v491_v57 = vsel %vm1655_vm8, %v479_v41, -inf  ;;  %v489_v58 = vsel %vm217_vm12, %v479_v41, -inf  ;;  %v495_v0 = vsel %vm1657_vm4, %v479_v41, -inf }
 0x10d   :  { %503 = vmax.xlane.f32.xlu1 %v502_v48  ;;  %497 = vmax.xlane.f32.xlu0 %v496_v49  ;;  %v457_v59 = vrot.slane %v450_v54, %v449_v43  ;;  %v511_v62 = vmax.f32 %v490_v60, %v491_v57  ;;  %v508_v63 = vmax.f32 %v488_v61, %v489_v58  ;;  %v493_v1 = vsel %vm1658_vm2, %v479_v41, -inf }
 0x10e   :  { %vm1659_vm8 = vcmp.eq.s32.totalorder %v1030_v8, %v1041_v14  ;;  %vm1660_vm14 = vcmp.eq.s32.totalorder %v1033_v9, %v1041_v14 }
 0x10f   :  { %463 = vst.msk [vmem:[#allocation8] sm:$0x3] %vm461_vm1, %v457_v59  ;;  %v494_v3 = vsel %vm1659_vm8, %v475_v39, -inf  ;;  %v492_v5 = vsel %vm1660_vm14, %v475_v39, -inf  ;;  %vm1661_vm8 = vcmp.eq.s32.totalorder %v1055_v19, %v1041_v14  ;;  %vm1662_vm1 = vcmp.eq.s32.totalorder %v1047_v16, %v1038_v12  ;;  %vm1663_vm4 = vmmov %vm1660_vm14 }
 0x110   :  { %v517_v6 = vmax.f32 %v494_v3, %v495_v0  ;;  %v514_v7 = vmax.f32 %v492_v5, %v493_v1  ;;  %vm1664_vm14 = vcmp.eq.s32.totalorder %v1030_v8, %v1041_v14 }
 0x111   :  { %506 = vmax.xlane.f32.xlu1 %v505_v55  ;;  %500 = vmax.xlane.f32.xlu0 %v499_v56 }
 0x115   :  { %512 = vmax.xlane.f32.xlu1 %v511_v62  ;;  %509 = vmax.xlane.f32.xlu0 %v508_v63 }
 0x119   :  { %518 = vmax.xlane.f32.xlu1 %v517_v6  ;;  %515 = vmax.xlane.f32.xlu0 %v514_v7 }
 0x196   :  { %v504_v15 = vpop.xlane.xlu1 %503  ;;  %v498_v17 = vpop.xlane.xlu0 %497 }
 0x197   :  { %v1357_v18 = vmax.f32 %v1349_v11, %v504_v15  ;;  %v1360_v20 = vmax.f32 %v1354_v13, %v498_v17 }
 0x199   :  { %739 = vst.msk [vmem:[%s1648_s7 + $0x10] sm:$0xff] %vm68_vm3, %v1357_v18  ;;  %737 = vst.msk [vmem:[%s1648_s7] sm:$0xff] %vm68_vm3, %v1360_v20  ;;  %530 = vperm.xlu0 %847, %v1360_v20  }
 0x19a   :  { %v507_v26 = vpop.xlane.xlu1 %506  ;;  %v501_v27 = vpop.xlane.xlu0 %500 }
 0x19b   :  { %v1384_v28 = vmax.f32 %v1365_v24, %v507_v26  ;;  %v1387_v29 = vmax.f32 %v1370_v25, %v501_v27 }
 0x19d   :  { %740 = vst.msk [vmem:[%s1648_s7 + $0x18] sm:$0xff] %vm68_vm3, %v1384_v28  ;;  %738 = vst.msk [vmem:[%s1648_s7 + $0x8] sm:$0xff] %vm68_vm3, %v1387_v29  ;;  %535 = vperm.xlu1 %848, %v1387_v29  }
 0x19e   :  { %v513_v32 = vpop.xlane.xlu1 %512  ;;  %v510_v33 = vpop.xlane.xlu0 %509 }
 0x19f   :  { %v1411_v34 = vmax.f32 %v1392_v30, %v513_v32  ;;  %v1414_v35 = vmax.f32 %v1408_v31, %v510_v33 }
 0x1a1   :  { %742 = vst.msk [vmem:[%s1648_s7 + $0x28] sm:$0xff] %vm68_vm3, %v1411_v34  ;;  %540 = vperm.xlu1 %848, %v1357_v18   ;;  %741 = vst.msk [vmem:[%s1648_s7 + $0x20] sm:$0xff] %vm68_vm3, %v1414_v35 }
 0x1a2   :  { %v519_v39 = vpop.xlane.xlu1 %518  ;;  %v516_v41 = vpop.xlane.xlu0 %515 }
 0x1a3   :  { %v1438_v42 = vmax.f32 %v1419_v37, %v519_v39  ;;  %v1441_v43 = vmax.f32 %v1424_v38, %v516_v41 }
 0x1a5   :  { %744 = vst.msk [vmem:[%s1648_s7 + $0x38] sm:$0xff] %vm68_vm3, %v1438_v42  ;;  %743 = vst.msk [vmem:[%s1648_s7 + $0x30] sm:$0xff] %vm68_vm3, %v1441_v43  ;;  %545 = vperm.xlu1 %848, %v1384_v28   ;;  %s965_s7 = smov [#allocation8]  }
 0x1a6   :  { %s751_s10 = sshll.u32 %s965_s7, 4  ;;  %s752_s10 = int_to_ptr.vmem [resolvable:$true] %s751_s10 }
 0x1a7   :  { %s929_s11 = scalar_lea.vmem %s752_s10, 32  ;;  %p934_p2 = scmp.lt.s32.totalorder %s752_s10, %s752_s10 }
 0x1a8   :  { %p930_p1 = scmp.ne.s32.totalorder %s752_s10, %s929_s11  ;;  %p935_p3 = scmp.lt.s32.totalorder %s929_s11, %s929_s11 }
 0x1a9   :  { %550 = vperm.xlu1 %848, %v1414_v35  }
 0x1aa   :  { %p936_p4 = por %p935_p3, %p934_p2 }
 0x1ac   :  { %p937_p5 = pnand %p936_p4, %p930_p1 }
 0x1ad   :  { %555 = vperm.xlu1 %848, %v1411_v34  }
 0x1b1   :  { %560 = vperm.xlu1 %848, %v1441_v43  }
 0x1b5   :  { %565 = vperm.xlu1 %848, %v1438_v42  }
 0x214   :  { %v531_v47 = vpop.permute.xlu0 %530 }
 0x215   :  { %v568_v51 = vsel %vm208_vm11, %v531_v47, 0.0  ;;  %v569_v52 = vsel %vm209_vm7, %v531_v47, 0.0 }
 0x218   :  { %v536_v44 = vpop.permute.xlu1 %535 }
 0x219   :  { %v570_v48 = vsel %vm210_vm5, %v536_v44, 0.0  ;;  %v571_v49 = vsel %vm211_vm15, %v536_v44, 0.0 }
 0x21a   :  { %v584_v55 = vadd.f32 %v570_v48, %v568_v51  ;;  %v597_v56 = vadd.f32 %v571_v49, %v569_v52 }
 0x21c   :  { %v541_v45 = vpop.permute.xlu1 %540 }
 0x21d   :  { %v572_v53 = vsel %vm212_vm13, %v541_v45, 0.0  ;;  %v573_v54 = vsel %vm213_vm9, %v541_v45, 0.0 }
 0x21e   :  { %v585_v59 = vadd.f32 %v584_v55, %v572_v53  ;;  %v598_v60 = vadd.f32 %v597_v56, %v573_v54 }
 0x220   :  { %v546_v46 = vpop.permute.xlu1 %545 }
 0x221   :  { %v574_v57 = vsel %vm214_vm6, %v546_v46, 0.0  ;;  %v575_v58 = vsel %vm215_vm0, %v546_v46, 0.0 }
 0x222   :  { %v586_v0 = vadd.f32 %v585_v59, %v574_v57  ;;  %v599_v1 = vadd.f32 %v598_v60, %v575_v58 }
 0x224   :  { %v551_v50 = vpop.permute.xlu1 %550 }
 0x225   :  { %v576_v62 = vsel %vm1661_vm8, %v551_v50, 0.0  ;;  %v577_v63 = vsel %vm217_vm12, %v551_v50, 0.0  ;;  %vm1665_vm8 = vcmp.eq.s32.totalorder %v1030_v8, %v1038_v12 }
 0x226   :  { %v587_v6 = vadd.f32 %v586_v0, %v576_v62  ;;  %v600_v7 = vadd.f32 %v599_v1, %v577_v63 }
 0x228   :  { %v556_v61 = vpop.permute.xlu1 %555 }
 0x229   :  { %v578_v3 = vsel %vm218_vm10, %v556_v61, 0.0  ;;  %v579_v5 = vsel %vm1662_vm1, %v556_v61, 0.0 }
 0x22a   :  { %v588_v26 = vadd.f32 %v587_v6, %v578_v3  ;;  %v601_v27 = vadd.f32 %v600_v7, %v579_v5 }
 0x22c   :  { %v561_v10 = vpop.permute.xlu1 %560 }
 0x22d   :  { %v580_v15 = vsel %vm1663_vm4, %v561_v10, 0.0  ;;  %v581_v17 = vsel %vm1658_vm2, %v561_v10, 0.0 }
 0x22e   :  { %v589_v32 = vadd.f32 %v588_v26, %v580_v15  ;;  %v602_v33 = vadd.f32 %v601_v27, %v581_v17 }
 0x230   :  { %v566_v39 = vpop.permute.xlu1 %565 }
 0x231   :  { %v582_v41 = vsel %vm1664_vm14, %v566_v39, 0.0  ;;  %v583_v44 = vsel %vm1665_vm8, %v566_v39, 0.0 }
 0x232   :  { %v590_v45 = vadd.f32 %v589_v32, %v582_v41  ;;  %v603_v46 = vadd.f32 %v602_v33, %v583_v44 }
 0x234   :  { %v591_v47 = vrot.slane %v590_v45, 4  ;;  %v604_v48 = vrot.slane %v603_v46, 4 }
 0x236   :  { %v592_v49 = vadd.f32 %v591_v47, %v590_v45  ;;  %v605_v50 = vadd.f32 %v604_v48, %v603_v46 }
 0x238   :  { %v593_v51 = vrot.slane %v592_v49, 2  ;;  %v606_v52 = vrot.slane %v605_v50, 2 }
 0x23a   :  { %v594_v53 = vadd.f32 %v593_v51, %v592_v49  ;;  %v607_v54 = vadd.f32 %v606_v52, %v605_v50 }
 0x23c   :  { %v595_v55 = vrot.slane %v594_v53, 1  ;;  %v608_v56 = vrot.slane %v607_v54, 1 }
 0x23e   :  { %v596_v57 = vadd.f32 %v595_v55, %v594_v53  ;;  %v609_v58 = vadd.f32 %v608_v56, %v607_v54 }
 0x240   :  { %v610_v59 = vsub.f32 %v1286_v36, %v596_v57  ;;  %v611_v60 = vsub.f32 %v1290_v40, %v609_v58 }
 0x242   :  { %v612_v61 = vmul.f32 1.442695, %v610_v59  ;;  %v614_v62 = vmul.f32 1.442695, %v611_v60 }
 0x244   :  { %849 = vpow2.f32 %v612_v61 }
 0x245   :  { %851 = vpow2.f32 %v614_v62 }
 0x251   :  { %v850_v63 = vpop.eup %849 }
 0x252   :  { %v852_v0 = vpop.eup %851  ;;  %v619_v1 = vrot.slane %v850_v63, %v1027_v4 }
 0x253   :  { %v623_v3 = vrot.slane %v852_v0, %v1027_v4 }
 0x254   :  { %v626_v5 = vsel %vm210_vm5, %v619_v1, 0.0  ;;  %v624_v36 = vsel %vm208_vm11, %v619_v1, 0.0  ;;  %v628_v4 = vsel %vm212_vm13, %v619_v1, 0.0  ;;  %v630_v17 = vsel %vm214_vm6, %v619_v1, 0.0  ;;  %vm1667_vm6 = vmmov %vm1662_vm1 }
 0x255   :  { %v627_v40 = vsel %vm211_vm15, %v623_v3, 0.0  ;;  %v625_v6 = vsel %vm209_vm7, %v623_v3, 0.0  ;;  %v629_v15 = vsel %vm213_vm9, %v623_v3, 0.0  ;;  %v631_v23 = vsel %vm215_vm0, %v623_v3, 0.0  ;;  %vm1668_vm0 = vmmov %vm1663_vm4 }
 0x256   :  { %v643_v7 = vadd.f32 %v627_v40, %v626_v5  ;;  %v640_v10 = vadd.f32 %v625_v6, %v624_v36  ;;  %v646_v2 = vadd.f32 %v629_v15, %v628_v4  ;;  %v649_v26 = vadd.f32 %v631_v23, %v630_v17  ;;  %vm1669_vm9 = vmmov %vm1658_vm2 }
 0x257   :  { %vm1666_vm15 = vcmp.eq.s32.totalorder %v1055_v19, %v1041_v14  ;;  %v633_v22 = vsel %vm217_vm12, %v623_v3, 0.0  ;;  %v634_v32 = vsel %vm218_vm10, %v619_v1, 0.0  ;;  %v635_v21 = vsel %vm1667_vm6, %v623_v3, 0.0  ;;  %vm1670_vm12 = vmmov %vm1664_vm14 }
 0x258   :  { %644 = vadd.xlane.f32.xlu0 %v643_v7  ;;  %641 = vadd.xlane.f32.xlu1 %v640_v10  ;;  %v632_v27 = vsel %vm1666_vm15, %v619_v1, 0.0  ;;  %v655_v39 = vadd.f32 %v635_v21, %v634_v32  ;;  %v636_v41 = vsel %vm1668_vm0, %v619_v1, 0.0  ;;  %v637_v19 = vsel %vm1669_vm9, %v623_v3, 0.0  ;;  %vm1671_vm10 = vmmov %vm1665_vm8 }
 0x259   :  { %v652_v33 = vadd.f32 %v633_v22, %v632_v27  ;;  %v638_v44 = vsel %vm1670_vm12, %v619_v1, 0.0  ;;  %v639_v16 = vsel %vm1671_vm10, %v623_v3, 0.0  ;;  %v658_v45 = vadd.f32 %v637_v19, %v636_v41 }
 0x25a   :  { %v661_v46 = vadd.f32 %v639_v16, %v638_v44 }
 0x25c   :  { %647 = vadd.xlane.f32.xlu0 %v646_v2  ;;  %650 = vadd.xlane.f32.xlu1 %v649_v26 }
 0x260   :  { %653 = vadd.xlane.f32.xlu0 %v652_v33  ;;  %656 = vadd.xlane.f32.xlu1 %v655_v39 }
 0x264   :  { %659 = vadd.xlane.f32.xlu0 %v658_v45  ;;  %662 = vadd.xlane.f32.xlu1 %v661_v46 }
 0x265   :  { %940 = shalt.err (!%p937_p5)
}
 0x266   :  { %754 = dma.vmem_to_hbm [thread:$0]  %s752_s10, 32, %s1647_s6, [#allocation4]   ;;  %v672_v8 = vsub.f32 %v1354_v13, %v1360_v20  ;;  %vm664_vm13 = vcmp.eq.f32.partialorder %v1354_v13, -inf  ;;  %v673_v9 = vsub.f32 %v1370_v25, %v1387_v29  ;;  %vm665_vm5 = vcmp.eq.f32.partialorder %v1370_v25, -inf  ;;  %v706_v61 = vld [vmem:[%s1649_s8 + $0x10] sm:$0xff]  ;;  %v707_v62 = vld [vmem:[%s1649_s8 + $0x18] sm:$0xff] }
 0x267   :  { %v674_v12 = vsub.f32 %v1349_v11, %v1357_v18  ;;  %vm666_vm7 = vcmp.eq.f32.partialorder %v1349_v11, -inf  ;;  %v675_v47 = vsub.f32 %v1365_v24, %v1384_v28  ;;  %vm667_vm11 = vcmp.eq.f32.partialorder %v1365_v24, -inf  ;;  %v708_v7 = vld [vmem:[%s1649_s8 + $0x20] sm:$0xff]  ;;  %v709_v10 = vld [vmem:[%s1649_s8 + $0x28] sm:$0xff]  ;;  %v710_v32 = vld [vmem:[%s1649_s8 + $0x30] sm:$0xff] }
 0x268   :  { %v680_v14 = vsel %vm664_vm13, -inf, %v672_v8  ;;  %v681_v48 = vsel %vm665_vm5, -inf, %v673_v9  ;;  %v677_v29 = vsub.f32 %v1392_v30, %v1411_v34  ;;  %vm669_vm1 = vcmp.eq.f32.partialorder %v1392_v30, -inf  ;;  %v711_v21 = vld [vmem:[%s1649_s8 + $0x38] sm:$0xff] }
 0x269   :  { %v688_v20 = vmul.f32 1.442695, %v680_v14  ;;  %v682_v49 = vsel %vm666_vm7, -inf, %v674_v12  ;;  %v690_v13 = vmul.f32 1.442695, %v681_v48  ;;  %v683_v50 = vsel %vm667_vm11, -inf, %v675_v47 }
 0x26a   :  { %v676_v18 = vsub.f32 %v1408_v31, %v1414_v35  ;;  %vm668_vm4 = vcmp.eq.f32.partialorder %v1408_v31, -inf  ;;  %v692_v11 = vmul.f32 1.442695, %v682_v49  ;;  %v694_v25 = vmul.f32 1.442695, %v683_v50 }
 0x26b   :  { %853 = vpow2.f32 %v688_v20  ;;  %v685_v28 = vsel %vm669_vm1, -inf, %v677_v29  ;;  %v679_v24 = vsub.f32 %v1419_v37, %v1438_v42  ;;  %vm671_vm2 = vcmp.eq.f32.partialorder %v1419_v37, -inf  ;;  %v705_v37 = vld [vmem:[%s1649_s8 + $0x8] sm:$0xff] }
 0x26c   :  { %855 = vpow2.f32 %v690_v13  ;;  %v684_v51 = vsel %vm668_vm4, -inf, %v676_v18  ;;  %v678_v34 = vsub.f32 %v1424_v38, %v1441_v43  ;;  %vm670_vm14 = vcmp.eq.f32.partialorder %v1424_v38, -inf  ;;  %v704_v38 = vld [vmem:[%s1649_s8] sm:$0xff] }
 0x26d   :  { %857 = vpow2.f32 %v692_v11  ;;  %v698_v30 = vmul.f32 1.442695, %v685_v28  ;;  %v696_v31 = vmul.f32 1.442695, %v684_v51  ;;  %v687_v35 = vsel %vm671_vm2, -inf, %v679_v24 }
 0x26e   :  { %859 = vpow2.f32 %v694_v25  ;;  %v686_v52 = vsel %vm670_vm14, -inf, %v678_v34  ;;  %v702_v53 = vmul.f32 1.442695, %v687_v35 }
 0x26f   :  { %861 = vpow2.f32 %v698_v30  ;;  %v700_v54 = vmul.f32 1.442695, %v686_v52 }
 0x270   :  { %863 = vpow2.f32 %v696_v31 }
 0x271   :  { %865 = vpow2.f32 %v702_v53 }
 0x272   :  { %867 = vpow2.f32 %v700_v54 }
 0x278   :  { %v854_v42 = vpop.eup %853 }
 0x279   :  { %v856_v55 = vpop.eup %855  ;;  %v712_v57 = vmul.f32 %v854_v42, %v704_v38 }
 0x27a   :  { %v858_v43 = vpop.eup %857  ;;  %v713_v56 = vmul.f32 %v856_v55, %v705_v37 }
 0x27b   :  { %v860_v58 = vpop.eup %859  ;;  %v714_v3 = vmul.f32 %v858_v43, %v706_v61 }
 0x27c   :  { %v862_v1 = vpop.eup %861  ;;  %v715_v5 = vmul.f32 %v860_v58, %v707_v62 }
 0x27d   :  { %v864_v36 = vpop.eup %863  ;;  %v717_v2 = vmul.f32 %v862_v1, %v709_v10 }
 0x27e   :  { %v866_v17 = vpop.eup %865  ;;  %v716_v23 = vmul.f32 %v864_v36, %v708_v7 }
 0x27f   :  { %v868_v26 = vpop.eup %867  ;;  %v719_v19 = vmul.f32 %v866_v17, %v711_v21 }
 0x280   :  { %v718_v41 = vmul.f32 %v868_v26, %v710_v32 }
 0x2e1   :  { %v645_v59 = vpop.xlane.xlu0 %644  ;;  %v642_v60 = vpop.xlane.xlu1 %641 }
 0x2e2   :  { %v721_v63 = vadd.f32 %v713_v56, %v645_v59  ;;  %v720_v0 = vadd.f32 %v712_v57, %v642_v60 }
 0x2e4   :  { %730 = vst.msk [vmem:[%s1649_s8 + $0x8] sm:$0xff] %vm68_vm3, %v721_v63  ;;  %729 = vst.msk [vmem:[%s1649_s8] sm:$0xff] %vm68_vm3, %v720_v0 }
 0x2e5   :  { %v648_v40 = vpop.xlane.xlu0 %647  ;;  %v651_v6 = vpop.xlane.xlu1 %650 }
 0x2e6   :  { %v722_v4 = vadd.f32 %v714_v3, %v648_v40  ;;  %v723_v15 = vadd.f32 %v715_v5, %v651_v6 }
 0x2e8   :  { %731 = vst.msk [vmem:[%s1649_s8 + $0x10] sm:$0xff] %vm68_vm3, %v722_v4  ;;  %732 = vst.msk [vmem:[%s1649_s8 + $0x18] sm:$0xff] %vm68_vm3, %v723_v15 }
 0x2e9   :  { %v654_v27 = vpop.xlane.xlu0 %653  ;;  %v657_v22 = vpop.xlane.xlu1 %656 }
 0x2ea   :  { %v724_v33 = vadd.f32 %v716_v23, %v654_v27  ;;  %v725_v39 = vadd.f32 %v717_v2, %v657_v22 }
 0x2ec   :  { %733 = vst.msk [vmem:[%s1649_s8 + $0x20] sm:$0xff] %vm68_vm3, %v724_v33  ;;  %734 = vst.msk [vmem:[%s1649_s8 + $0x28] sm:$0xff] %vm68_vm3, %v725_v39 }
 0x2ed   :  { %v660_v44 = vpop.xlane.xlu0 %659  ;;  %v663_v16 = vpop.xlane.xlu1 %662 }
 0x2ee   :  { %v726_v45 = vadd.f32 %v718_v41, %v660_v44  ;;  %v727_v46 = vadd.f32 %v719_v19, %v663_v16 }
 0x2f0   :  { %735 = vst.msk [vmem:[%s1649_s8 + $0x30] sm:$0xff] %vm68_vm3, %v726_v45  ;;  %736 = vst.msk [vmem:[%s1649_s8 + $0x38] sm:$0xff] %vm68_vm3, %v727_v46 }
 0x2f1   :  { %953 = dma.done.wait [#allocation4], 32  }
 0x2f2   :  { %954 = vsyncadd [#allocation4], 4294967264 }
 0x2f3   :  { %766 = vsyncpa [#allocation3], 1 }
 0x2f4   :  { %767 = vsyncpa [#allocation6], 1 }
 0x2f5   :  { %768 = vsyncpa [#allocation4], 1 }

</bundles_post_ra>
